<compile_context>
chip_gen: v6e
topology: v6e:2x2x1
jax: 0.10.0
libtpu: 0.0.40
codegen_flags: <defaults>
</compile_context>

<pallas_src>
import functools

import jax
import jax.numpy as jnp
from jax.experimental import pallas as pl
from jax.experimental.pallas import tpu as pltpu


def _res_block_kernel(alpha_ref, x_ref, w_ref, b_ref, res_ref, o_ref):
    # grid = (M tiles, N tiles, K tiles); K (reduction) is last.  The output
    # block index (i, j) is K-invariant, so o_ref stays resident in VMEM
    # across the K loop and doubles as the f32 accumulator.
    k = pl.program_id(2)

    @pl.when(k == 0)
    def _():
        o_ref[...] = jnp.zeros_like(o_ref)

    # relu on the bf16 operand (monotone rounding + bf16(0)=0 => bit-identical
    # result to relu-then-cast); halves VALU work on bf16-VPU chips (v6e/v7x).
    h = jnp.maximum(x_ref[...].astype(w_ref.dtype), 0)
    # Weight is pre-packed as [K, N]: canonical MXU contraction, no transpose.
    o_ref[...] += jnp.dot(h, w_ref[...], preferred_element_type=jnp.float32)

    @pl.when(k == pl.num_programs(2) - 1)
    def _():
        # TODO(synk): dropout with p > 0 would need pltpu.prng_* masking; p=0.0 here.
        y = o_ref[...] + b_ref[...]
        o_ref[...] = res_ref[...] + alpha_ref[0, 0] * y


def _round_up(v, m):
    return (v + m - 1) // m * m


def _vmem_capacity_bytes():
    try:
        return int(pltpu.get_tpu_info().vmem_capacity_bytes)
    except Exception:
        return 64 * 1024 * 1024  # conservative fallback: v7x per-TC VMEM


def _tile_vmem_bytes(tm, tn, tk):
    # Double-buffered pipeline footprint of one grid step's operands.
    return (2 * tm * tk * 4      # LHS x tile (f32)
            + 2 * tk * tn * 2    # weight tile (bf16)
            + 2 * 1 * tn * 4     # bias tile
            + 2 * tm * tn * 4    # residual tile
            + 2 * tm * tn * 4)   # output / accumulator tile


def _choose_tiles(B, Hp, budget_bytes):
    # M tile: up to 256 rows (fills the 256-wide MXU on v6e/v7x, fine on v5e);
    # pad the batch up to the tile so tm never degenerates for awkward B.
    if B <= 256:
        tm = _round_up(B, 8)
        Mp = tm
    else:
        tm = 256
        Mp = _round_up(B, tm)

    # Small/medium-problem fast path: whole hidden dim in one tile -> grid is
    # M-only, the weight streams exactly once, the LHS is never re-read.
    if _tile_vmem_bytes(tm, Hp, Hp) <= budget_bytes:
        return Mp, tm, Hp, Hp

    # Otherwise: largest tn first (fewer LHS re-reads), then largest tk, among
    # divisors of Hp that fit the budget.  Hp is a multiple of 128 so the
    # (128, 128) fallback always divides.
    for tn in (2048, 1024, 512, 256, 128):
        if Hp % tn:
            continue
        for tk in (2048, 1024, 512, 256, 128):
            if Hp % tk:
                continue
            if _tile_vmem_bytes(tm, tn, tk) <= budget_bytes:
                return Mp, tm, tn, tk
    return Mp, tm, 128, 128


def prepare_params(weight, bias, matmul_dtype=jnp.bfloat16):
    """One-time (parameter-init-time) weight/bias packing.  NOT per-call.

    weight: [H, H] in PyTorch nn.Linear layout [out_features, in_features].
    Returns (w_packed [Hp, Hp] bf16 in [in, out] layout, b_packed [1, Hp] f32).
    """
    out_f, in_f = weight.shape
    assert out_f == in_f, "ClassicResBlock uses a square Linear"
    H = in_f
    Hp = _round_up(H, 128)
    w = jnp.asarray(weight).T.astype(matmul_dtype)          # [in, out] = [K, N]
    b = jnp.asarray(bias, jnp.float32).reshape(1, H)
    if Hp != H:
        w = jnp.pad(w, ((0, Hp - H), (0, Hp - H)))
        b = jnp.pad(b, ((0, 0), (0, Hp - H)))
    return w, b


@functools.partial(jax.jit, static_argnames=("tiles",))
def classic_res_block(x, w_packed, b_packed, alpha, tiles=None):
    """out = x + alpha * (relu(x) @ W^T + b)   (dropout p=0 == identity)

    x:        [B, H] activations.
    w_packed: [Hp, Hp] bf16 from prepare_params (transposed + padded weight).
    b_packed: [1, Hp] f32 padded bias from prepare_params.
    alpha:    scalar.
    tiles:    optional (tm, tn, tk) override (testing / tuning).
    """
    B, H = x.shape
    Hp = w_packed.shape[0]

    cap = _vmem_capacity_bytes()
    budget = int(cap * 0.6)            # headroom for compiler scratch / spills
    if tiles is None:
        Mp, tm, tn, tk = _choose_tiles(B, Hp, budget)
    else:
        tm, tn, tk = tiles
        Mp = _round_up(B, tm)

    x_p = x.astype(jnp.float32)
    if (Mp, Hp) != (B, H):
        x_p = jnp.pad(x_p, ((0, Mp - B), (0, Hp - H)))
    alpha2 = jnp.asarray(alpha, jnp.float32).reshape(1, 1)

    grid = (Mp // tm, Hp // tn, Hp // tk)
    vmem_limit = min(int(cap * 0.9),
                     max(_tile_vmem_bytes(tm, tn, tk) + (8 << 20), 32 << 20))

    out = pl.pallas_call(
        _res_block_kernel,
        out_shape=jax.ShapeDtypeStruct((Mp, Hp), jnp.float32),
        grid=grid,
        in_specs=[
            pl.BlockSpec((1, 1), lambda i, j, k: (0, 0),
                         memory_space=pltpu.SMEM),            # alpha scalar
            pl.BlockSpec((tm, tk), lambda i, j, k: (i, k)),   # relu / matmul LHS
            pl.BlockSpec((tk, tn), lambda i, j, k: (k, j)),   # weight [K, N]
            pl.BlockSpec((1, tn), lambda i, j, k: (0, j)),    # bias
            pl.BlockSpec((tm, tn), lambda i, j, k: (i, j)),   # residual (out-aligned)
        ],
        out_specs=pl.BlockSpec((tm, tn), lambda i, j, k: (i, j)),
        compiler_params=pltpu.CompilerParams(
            dimension_semantics=("parallel", "parallel", "arbitrary"),
            vmem_limit_bytes=int(vmem_limit),
        ),
    )(alpha2, x_p, w_packed, b_packed, x_p)

    if (Mp, Hp) != (B, H):
        out = out[:B, :H]
    return out.astype(x.dtype)


def _reference(x, weight, bias, alpha, matmul_dtype=jnp.bfloat16):
    # Mirrors the kernel numerics (bf16 MXU operands, f32 accumulation).
    h = jnp.maximum(x, 0.0).astype(matmul_dtype)
    y = jnp.dot(h, weight.astype(matmul_dtype).T,
                preferred_element_type=jnp.float32) + bias.astype(jnp.float32)
    return x + jnp.asarray(alpha, jnp.float32) * y


if __name__ == "__main__":
    # --- Test 1: module-sized small case (hidden_size=32, batch=8) ----------
    kx, kw, kb = jax.random.split(jax.random.PRNGKey(0), 3)
    B, H = 8, 32
    x = jax.random.normal(kx, (B, H), dtype=jnp.float32)
    weight = jax.random.normal(kw, (H, H), dtype=jnp.float32) * (1.0 / jnp.sqrt(H))
    bias = jax.random.normal(kb, (H,), dtype=jnp.float32) * 0.1
    w_p, b_p = prepare_params(weight, bias)   # one-time, init-style packing

    # nn.Parameter(torch.zeros(1)) -> alpha initializes to 0: output == x exactly.
    out0 = classic_res_block(x, w_p, b_p, jnp.zeros((), jnp.float32))
    jax.block_until_ready(out0)
    assert jnp.allclose(out0, x, atol=1e-6), "alpha=0 must return the identity"

    alpha1 = jnp.float32(0.5)
    out1 = classic_res_block(x, w_p, b_p, alpha1)
    jax.block_until_ready(out1)
    ref1 = _reference(x, weight, bias, alpha1)
    assert jnp.allclose(out1, ref1, atol=1e-4, rtol=1e-4), "mismatch vs bf16 reference"
    ref1_f32 = x + alpha1 * (jnp.maximum(x, 0.0) @ weight.T + bias)
    assert jnp.allclose(out1, ref1_f32, atol=1e-1), "too far from f32 reference"

    # --- Test 2: batch > tile (exercises M-tiling + row padding to tm) ------
    B2, H2 = 300, 256
    kx2, kw2, kb2 = jax.random.split(jax.random.PRNGKey(1), 3)
    x2 = jax.random.normal(kx2, (B2, H2), dtype=jnp.float32)
    wt2 = jax.random.normal(kw2, (H2, H2), dtype=jnp.float32) * (1.0 / jnp.sqrt(H2))
    bi2 = jax.random.normal(kb2, (H2,), dtype=jnp.float32) * 0.1
    w2_p, b2_p = prepare_params(wt2, bi2)
    out2 = classic_res_block(x2, w2_p, b2_p, jnp.float32(0.5))
    jax.block_until_ready(out2)
    ref2 = _reference(x2, wt2, bi2, jnp.float32(0.5))
    assert out2.shape == (B2, H2)
    assert jnp.allclose(out2, ref2, atol=1e-3, rtol=1e-3), "mismatch (M-tiled case)"

    # --- Test 3: forced small tiles (exercises K accumulation + N tiling) ---
    B3, H3 = 8, 384
    kx3, kw3, kb3 = jax.random.split(jax.random.PRNGKey(2), 3)
    x3 = jax.random.normal(kx3, (B3, H3), dtype=jnp.float32)
    wt3 = jax.random.normal(kw3, (H3, H3), dtype=jnp.float32) * (1.0 / jnp.sqrt(H3))
    bi3 = jax.random.normal(kb3, (H3,), dtype=jnp.float32) * 0.1
    w3_p, b3_p = prepare_params(wt3, bi3)
    out3 = classic_res_block(x3, w3_p, b3_p, jnp.float32(0.5), tiles=(8, 128, 128))
    jax.block_until_ready(out3)
    ref3 = _reference(x3, wt3, bi3, jnp.float32(0.5))
    assert jnp.allclose(out3, ref3, atol=1e-3, rtol=1e-3), "mismatch (K/N-tiled case)"

    print("KERNEL_OK")
</pallas_src>

<mosaic_0001>
module attributes {stable_mosaic.version = 11 : i64} {
  func.func @_res_block_kernel(%arg0: i32, %arg1: i32, %arg2: i32, %arg3: memref<1x1xf32, #tpu.memory_space<smem>>, %arg4: memref<8x128xf32, #tpu.memory_space<vmem>>, %arg5: memref<128x128xbf16, #tpu.memory_space<vmem>>, %arg6: memref<1x128xf32, #tpu.memory_space<vmem>>, %arg7: memref<8x128xf32, #tpu.memory_space<vmem>>, %arg8: memref<8x128xf32, #tpu.memory_space<vmem>>) attributes {dimension_semantics = [#tpu.dimension_semantics<parallel>, #tpu.dimension_semantics<parallel>, #tpu.dimension_semantics<arbitrary>], iteration_bounds = array<i64: 1, 1, 1>, scalar_prefetch = 0 : i64, scratch_operands = 0 : i64, tpu.core_type = #tpu.core_type<tc>, window_params = [{transform_indices = @transform_0, window_bounds = array<i64: 1, 1>}, {transform_indices = @transform_1, window_bounds = array<i64: 8, 128>}, {transform_indices = @transform_2, window_bounds = array<i64: 128, 128>}, {transform_indices = @transform_3, window_bounds = array<i64: 1, 128>}, {transform_indices = @transform_4, window_bounds = array<i64: 8, 128>}, {transform_indices = @transform_5, window_bounds = array<i64: 8, 128>}]} {
    %c0_i32 = arith.constant 0 : i32
    %0 = arith.cmpi eq, %arg2, %c0_i32 : i32
    %1 = arith.extui %0 : i1 to i32
    %c0_i32_0 = arith.constant 0 : i32
    %2 = arith.cmpi ne, %1, %c0_i32_0 : i32
    scf.if %2 {
      %cst_11 = arith.constant 0.000000e+00 : f32
      %15 = vector.broadcast %cst_11 : f32 to vector<8x128xf32>
      %c0_12 = arith.constant 0 : index
      %c0_13 = arith.constant 0 : index
      %16 = vector.load %arg8[%c0_12, %c0_13] : memref<8x128xf32, #tpu.memory_space<vmem>>, vector<8x128xf32>
      tpu.vector_store %arg8[%c0_12, %c0_13], %15 {strides = array<i32>} : memref<8x128xf32, #tpu.memory_space<vmem>>, vector<8x128xf32>,
    } else {
    }
    %c0 = arith.constant 0 : index
    %c0_1 = arith.constant 0 : index
    %3 = vector.load %arg4[%c0, %c0_1] : memref<8x128xf32, #tpu.memory_space<vmem>>, vector<8x128xf32>
    %4 = arith.truncf %3 : vector<8x128xf32> to vector<8x128xbf16>
    %cst = arith.constant 0.000000e+00 : bf16
    %5 = vector.broadcast %cst : bf16 to vector<8x128xbf16>
    %6 = arith.maximumf %4, %5 : vector<8x128xbf16>
    %c0_2 = arith.constant 0 : index
    %c0_3 = arith.constant 0 : index
    %7 = vector.load %arg8[%c0_2, %c0_3] : memref<8x128xf32, #tpu.memory_space<vmem>>, vector<8x128xf32>
    %c0_4 = arith.constant 0 : index
    %c0_5 = arith.constant 0 : index
    %8 = vector.load %arg5[%c0_4, %c0_5] : memref<128x128xbf16, #tpu.memory_space<vmem>>, vector<128x128xbf16>
    %cst_6 = arith.constant dense<0.000000e+00> : vector<8x128xf32>
    %9 = tpu.matmul %6, %8, %cst_6 {dimension_numbers = #tpu.dot_dimension_numbers<[1], [0], [0], [1], [0, 0, 1, 1], [], []>} : vector<8x128xbf16>, vector<128x128xbf16>, vector<8x128xf32> -> vector<8x128xf32>
    %10 = arith.addf %7, %9 : vector<8x128xf32>
    %c0_7 = arith.constant 0 : index
    %c0_8 = arith.constant 0 : index
    %11 = vector.load %arg8[%c0_7, %c0_8] : memref<8x128xf32, #tpu.memory_space<vmem>>, vector<8x128xf32>
    tpu.vector_store %arg8[%c0_7, %c0_8], %10 {strides = array<i32>} : memref<8x128xf32, #tpu.memory_space<vmem>>, vector<8x128xf32>,
    %c0_i32_9 = arith.constant 0 : i32
    %12 = arith.cmpi eq, %arg2, %c0_i32_9 : i32
    %13 = arith.extui %12 : i1 to i32
    %c0_i32_10 = arith.constant 0 : i32
    %14 = arith.cmpi ne, %13, %c0_i32_10 : i32
    scf.if %14 {
      %c0_11 = arith.constant 0 : index
      %c0_12 = arith.constant 0 : index
      %15 = vector.load %arg8[%c0_11, %c0_12] : memref<8x128xf32, #tpu.memory_space<vmem>>, vector<8x128xf32>
      %c0_13 = arith.constant 0 : index
      %c0_14 = arith.constant 0 : index
      %16 = vector.load %arg6[%c0_13, %c0_14] : memref<1x128xf32, #tpu.memory_space<vmem>>, vector<1x128xf32>
      %17 = vector.broadcast %16 : vector<1x128xf32> to vector<8x128xf32>
      %18 = arith.addf %15, %17 : vector<8x128xf32>
      %c0_15 = arith.constant 0 : index
      %c0_16 = arith.constant 0 : index
      %19 = vector.load %arg7[%c0_15, %c0_16] : memref<8x128xf32, #tpu.memory_space<vmem>>, vector<8x128xf32>
      %c0_17 = arith.constant 0 : index
      %c0_18 = arith.constant 0 : index
      %20 = memref.load %arg3[%c0_17, %c0_18] : memref<1x1xf32, #tpu.memory_space<smem>>
      %21 = vector.broadcast %20 : f32 to vector<8x128xf32>
      %22 = arith.mulf %21, %18 : vector<8x128xf32>
      %23 = arith.addf %19, %22 : vector<8x128xf32>
      %c0_19 = arith.constant 0 : index
      %c0_20 = arith.constant 0 : index
      %24 = vector.load %arg8[%c0_19, %c0_20] : memref<8x128xf32, #tpu.memory_space<vmem>>, vector<8x128xf32>
      tpu.vector_store %arg8[%c0_19, %c0_20], %23 {strides = array<i32>} : memref<8x128xf32, #tpu.memory_space<vmem>>, vector<8x128xf32>,
    } else {
    }
    return
  }
  func.func @transform_0(%arg0: i32, %arg1: i32, %arg2: i32) -> (i32, i32) {
    %c0_i32 = arith.constant 0 : i32
    %c0_i32_0 = arith.constant 0 : i32
    %c0_i32_1 = arith.constant 0 : i32
    return %c0_i32, %c0_i32_0 : i32, i32
  }
  func.func @transform_1(%arg0: i32, %arg1: i32, %arg2: i32) -> (i32, i32) {
    %c0_i32 = arith.constant 0 : i32
    return %arg0, %arg2 : i32, i32
  }
  func.func @transform_2(%arg0: i32, %arg1: i32, %arg2: i32) -> (i32, i32) {
    %c0_i32 = arith.constant 0 : i32
    return %arg2, %arg1 : i32, i32
  }
  func.func @transform_3(%arg0: i32, %arg1: i32, %arg2: i32) -> (i32, i32) {
    %c0_i32 = arith.constant 0 : i32
    %c0_i32_0 = arith.constant 0 : i32
    return %c0_i32, %arg1 : i32, i32
  }
  func.func @transform_4(%arg0: i32, %arg1: i32, %arg2: i32) -> (i32, i32) {
    %c0_i32 = arith.constant 0 : i32
    return %arg0, %arg1 : i32, i32
  }
  func.func @transform_5(%arg0: i32, %arg1: i32, %arg2: i32) -> (i32, i32) {
    %c0_i32 = arith.constant 0 : i32
    return %arg0, %arg1 : i32, i32
  }
}

</mosaic_0001>

<bundles_post_ra>
// kernel: classic_res_block.1
= control target key start
LH: loop header
LB: loop body
LE: loop exit
PB: predicated region body
PF: predicated region fallthrough
CT: control target
= control target key end

     0   :  { %11 = vsyncpa [#allocation4], 0  ;;  %s337_s0 = inlined_call_operand.<no memory space> [shape: f32[1,1], index: 0, kind: input, shape index: {}]   ;;  %s338_s1 = inlined_call_operand.vmem [shape: f32[8,128], index: 1, kind: input, shape index: {}, may-alias: {1,4}]   ;;  %s339_s2 = inlined_call_operand.hbm [shape: bf16[128,128], index: 2, kind: input, shape index: {}]   ;;  %s340_s3 = inlined_call_operand.vmem [shape: f32[1,128], index: 3, kind: input, shape index: {}]   ;;  %s341_s4 = inlined_call_operand.vmem [shape: f32[8,128], index: 4, kind: input, shape index: {}, may-alias: {1,4}]   ;;  %s342_s5 = inlined_call_operand.hbm [shape: f32[8,128], index: 5, kind: output, shape index: {}]  }
   0x1   :  { %12 = vsyncpa [#allocation5], 0  ;;  %s282_s18 = smov [#allocation3]  }
   0x2   :  { %s22_s19 = sshll.u32 %s282_s18, 4  ;;  %s23_s19 = int_to_ptr.vmem [resolvable:$true] %s22_s19 }
   0x3   :  { %s246_s20 = scalar_lea.vmem %s23_s19, 1024  ;;  %p251_p1 = scmp.lt.s32.totalorder %s23_s19, %s23_s19 }
   0x4   :  { %p247_p0 = scmp.ne.s32.totalorder %s23_s19, %s246_s20  ;;  %p252_p2 = scmp.lt.s32.totalorder %s246_s20, %s246_s20 }
   0x6   :  { %p253_p3 = por %p252_p2, %p251_p1 }
   0x8   :  { %p254_p4 = pnand %p253_p3, %p247_p0 }
   0xa   :  { %257 = shalt.err (!%p254_p4)
}
   0xb   :  { %s283_s21 = smov 64   ;;  %s284_s22 = smov 4  }
   0xc   :  { %28 = dma.hbm_to_vmem [thread:$0]  %s339_s2, 1024, %s23_s19, [#allocation4], %s283_s21, %s283_s21, %s284_s22  }
   0xd   :  { %278 = dma.done.wait [#allocation4], 1024  }
   0xe   :  { %279 = vsyncadd [#allocation4], 4294966272  ;;  %v285_v0 = vmov 0.0   ;;  %vm286_vm0 = vmmov 0   ;;  %v230_v1 = vld [vmem:[#allocation3 + $0x38] sm:$0xff]   ;;  %v231_v2 = vld [vmem:[#allocation3 + $0x30] sm:$0xff]   ;;  %v166_v16 = vstv %s337_s0 }
   0xf   :  { %203 = vmatprep.subr.bf16.mxu0 %v285_v0  ;;  %219 = vmatprep.mubr.msk.bf16.mxu0 %vm286_vm0, %v285_v0  ;;  %v232_v3 = vld [vmem:[#allocation3 + $0x28] sm:$0xff]   ;;  %v233_v4 = vld [vmem:[#allocation3 + $0x20] sm:$0xff]   ;;  %v234_v5 = vld [vmem:[#allocation3 + $0x18] sm:$0xff]   ;;  %v287_v11 = vmov 0   ;;  %s288_s6 = smov [#allocation6]  }
  0x10   :  { %204 = vmatpush3.bf16.msra.mxu0 %v230_v1  ;;  %v235_v6 = vld [vmem:[#allocation3 + $0x10] sm:$0xff]   ;;  %v236_v7 = vld [vmem:[#allocation3 + $0x8] sm:$0xff]   ;;  %v42_v8 = vld [vmem:[%s338_s1] sm:$0xff]  ;;  %s176_s7 = sshll.u32 %s288_s6, 4  ;;  %s177_s7 = int_to_ptr.vmem [resolvable:$true] %s176_s7 }
  0x11   :  { %205 = vmatprep.subr.bf16.mxu0 %v285_v0  ;;  %v43_v9 = vpack.c.bf16 %v42_v8, %v42_v8  ;;  %v237_v10 = vld [vmem:[#allocation3] sm:$0xff]   ;;  %s258_s8 = scalar_lea.vmem %s177_s7, 128  ;;  %p263_p6 = scmp.lt.s32.totalorder %s177_s7, %s177_s7 }
  0x12   :  { %v193_v14 = vld [vmem:[%s340_s3] ss:$0 sm:$0xff]  ;;  %p259_p5 = scmp.ne.s32.totalorder %s177_s7, %s258_s8  ;;  %p264_p7 = scmp.lt.s32.totalorder %s258_s8, %s258_s8 }
  0x13   :  { %v44_v12 = vmax.bf16 %v287_v11, %v43_v9  ;;  %v164_v19 = vld [vmem:[%s341_s4] sm:$0xff] }
  0x14   :  { %206 = vmatpush3.bf16.msra.mxu0 %v231_v2  ;;  %p265_p8 = por %p264_p7, %p263_p6 }
  0x15   :  { %207 = vmatprep.subr.bf16.mxu0 %v285_v0 }
  0x16   :  { %p266_p9 = pnand %p265_p8, %p259_p5 }
  0x18   :  { %208 = vmatpush3.bf16.msra.mxu0 %v232_v3 }
  0x19   :  { %209 = vmatprep.subr.bf16.mxu0 %v285_v0 }
  0x1c   :  { %210 = vmatpush3.bf16.msra.mxu0 %v233_v4 }
  0x1d   :  { %211 = vmatprep.subr.bf16.mxu0 %v285_v0 }
  0x20   :  { %212 = vmatpush3.bf16.msra.mxu0 %v234_v5 }
  0x21   :  { %213 = vmatprep.subr.bf16.mxu0 %v285_v0 }
  0x24   :  { %214 = vmatpush3.bf16.msra.mxu0 %v235_v6 }
  0x25   :  { %215 = vmatprep.subr.bf16.mxu0 %v285_v0 }
  0x28   :  { %216 = vmatpush3.bf16.msra.mxu0 %v236_v7 }
  0x29   :  { %217 = vmatprep.subr.bf16.mxu0 %v285_v0 }
  0x2c   :  { %218 = vmatpush3.bf16.msra.mxu0 %v237_v10 }
  0x2f   :  { %220 = vmatmul.mubr.bf16.vlgmr.msra.gmra.mxu0 %v44_v12 }
  0xef   :  { %v144_v13 = vpop.f32.mrf.mxu0 }
  0xf0   :  { %v163_v17 = vadd.f32 %v193_v14, %v144_v13 }
  0xf1   :  { %v221_v15 = vpop.f32.mrf.mxu0 }
  0xf2   :  { %v167_v20 = vmul.f32 %v166_v16, %v163_v17 }
  0xf3   :  { %v147_v18 = vpop.f32.mrf.mxu0 }
  0xf4   :  { %v168_v22 = vadd.f32 %v167_v20, %v164_v19 }
  0xf5   :  { %v222_v21 = vpop.f32.mrf.mxu0 }
  0xf6   :  { %169 = vst [vmem:[#allocation6] sm:$0xff] %v168_v22 }
  0xf7   :  { %269 = shalt.err (!%p266_p9)
}
  0xf8   :  { %179 = dma.vmem_to_hbm [thread:$0]  %s177_s7, 128, %s342_s5, [#allocation5]  }
  0xf9   :  { %280 = dma.done.wait [#allocation5], 128  }
  0xfa   :  { %281 = vsyncadd [#allocation5], 4294967168 }
  0xfb   :  { %183 = vsyncpa [#allocation4], 1 }
  0xfc   :  { %184 = vsyncpa [#allocation5], 1 }

</bundles_post_ra>
